<compile_context>
chip_gen: v7x
topology: tpu7x:2x2x1
jax: 0.10.0
libtpu: 0.0.40
codegen_flags: <defaults>
</compile_context>

<pallas_src>
import functools

import jax
import jax.numpy as jnp
from jax.experimental import pallas as pl
from jax.experimental.pallas import tpu as pltpu


def _round_up(n, m):
    return ((n + m - 1) // m) * m


def _concat_linear_nchw_kernel(x_ref, y_ref, wx_ref, wy_ref, b_ref, o_ref):
    # x_ref, y_ref, o_ref : (C, T_hw) tiles (batch dim squeezed)
    # wx_ref, wy_ref      : (C, C) resident weights
    # b_ref               : (C, 1) f32 bias (broadcast over lanes)
    acc = jnp.dot(wx_ref[...], x_ref[...], preferred_element_type=jnp.float32)
    acc = acc + jnp.dot(wy_ref[...], y_ref[...], preferred_element_type=jnp.float32)
    o_ref[...] = (acc + b_ref[...]).astype(o_ref.dtype)


def _choose_hw_tile(HW, B, C, itemsize):
    """Pick a lane-dense HW tile: large (amortize per-step overhead), but with
    enough grid steps to feed both v7x TensorCores, and a bounded VMEM footprint."""
    LANE = 128
    if HW <= LANE:
        return HW, HW                      # single full block (legal: full dim)
    HWp0 = _round_up(HW, LANE)
    target_steps = max(1, -(-8 // B))      # aim for >= ~8 total grid steps
    t = _round_up(-(-HWp0 // target_steps), LANE)
    t = max(LANE, min(t, 2048))

    def footprint(tt):                     # double-buffered x+y+out tiles + f32 acc
        return 2 * 3 * C * tt * itemsize + C * tt * 4

    while t > LANE and footprint(t) > 16 * 2**20:
        t -= LANE
    return t, _round_up(HW, t)


def concat_back_dim(x, y, weight, bias):
    """Pallas ConcatBackDim forward.

    x, y   : (B, C, H, W)
    weight : (C, 2C)   -- torch nn.Linear(dim*2, dim) layout (out, in)
    bias   : (C,)
    returns: (B, C, H, W)
    """
    B, C, H, W = x.shape
    assert y.shape == x.shape
    HW = H * W
    itemsize = jnp.dtype(x.dtype).itemsize

    # ---- free reshapes only (no transpose, no channel padding): NCHW is the
    #      transposed row layout, so per batch  out = Wx @ x + Wy @ y + b.
    x3 = x.reshape(B, C, HW)
    y3 = y.reshape(B, C, HW)
    wx = weight[:, :C].astype(x.dtype)      # (C, C) acts on x
    wy = weight[:, C:].astype(x.dtype)      # (C, C) acts on y
    b2 = bias.astype(jnp.float32).reshape(C, 1)

    # ---- tiling over the lane-dense HW axis.
    t_hw, HWp = _choose_hw_tile(HW, B, C, itemsize)
    if HWp != HW:
        pad = ((0, 0), (0, 0), (0, HWp - HW))
        x3 = jnp.pad(x3, pad)
        y3 = jnp.pad(y3, pad)
    grid = (B, HWp // t_hw)

    # ---- VMEM budget from the real footprint (no artificial 32 MiB floor).
    est = (2 * 2 * C * t_hw * itemsize          # x, y tiles, double-buffered
           + 2 * C * t_hw * itemsize            # out tiles, double-buffered
           + 2 * (2 * C * C * itemsize + C * 4) # weights + bias (worst case 2 bufs)
           + C * t_hw * 4)                      # f32 accumulator headroom
    vmem_limit = int(min(max(2 * est, 8 * 2**20), 64 * 2**20))

    cost = pl.CostEstimate(
        flops=4 * B * HW * C * C,
        transcendentals=0,
        bytes_accessed=3 * B * HW * C * itemsize + 2 * C * C * itemsize + C * 4,
    )

    out = pl.pallas_call(
        _concat_linear_nchw_kernel,
        out_shape=jax.ShapeDtypeStruct((B, C, HWp), x.dtype),
        grid=grid,
        in_specs=[
            pl.BlockSpec((None, C, t_hw), lambda b, j: (b, 0, j)),  # x tile
            pl.BlockSpec((None, C, t_hw), lambda b, j: (b, 0, j)),  # y tile
            pl.BlockSpec((C, C), lambda b, j: (0, 0)),              # Wx (resident)
            pl.BlockSpec((C, C), lambda b, j: (0, 0)),              # Wy (resident)
            pl.BlockSpec((C, 1), lambda b, j: (0, 0)),              # bias (resident)
        ],
        out_specs=pl.BlockSpec((None, C, t_hw), lambda b, j: (b, 0, j)),
        compiler_params=pltpu.CompilerParams(
            dimension_semantics=("parallel", "parallel"),
            vmem_limit_bytes=vmem_limit),
        cost_estimate=cost,
    )(x3, y3, wx, wy, b2)

    if HWp != HW:
        out = out[:, :, :HW]
    return out.reshape(B, C, H, W)


def _reference(x, y, weight, bias):
    B, C, H, W = x.shape
    xr = jnp.transpose(x, (0, 2, 3, 1)).reshape(B, H * W, C)
    yr = jnp.transpose(y, (0, 2, 3, 1)).reshape(B, H * W, C)
    cat = jnp.concatenate([xr, yr], axis=-1)
    out = cat @ weight.T + bias
    return jnp.transpose(out.reshape(B, H, W, C), (0, 3, 1, 2))


if __name__ == "__main__":
    key = jax.random.PRNGKey(0)
    B, C, H, W = 2, 32, 16, 16

    k_x, k_y, k_w, k_b = jax.random.split(key, 4)
    x = jax.random.normal(k_x, (B, C, H, W), dtype=jnp.float32)
    y = jax.random.normal(k_y, (B, C, H, W), dtype=jnp.float32)

    # Deterministic synthetic nn.Linear(2C -> C) parameters (torch layout).
    weight = jax.random.normal(k_w, (C, 2 * C), jnp.float32) * 0.05
    bias = jax.random.normal(k_b, (C,), jnp.float32) * 0.01

    out = concat_back_dim(x, y, weight, bias)
    jax.block_until_ready(out)

    ref = _reference(x, y, weight, bias)
    assert out.shape == ref.shape
    # MXU default-precision f32 matmul vs f32 reference -> small tolerance.
    assert jnp.allclose(out, ref, atol=2e-2, rtol=2e-2), "mismatch vs reference"

    print("KERNEL_OK")
</pallas_src>

<mosaic_0001>
module attributes {stable_mosaic.version = 11 : i64} {
  func.func @_concat_linear_nchw_kernel(%arg0: i32, %arg1: i32, %arg2: memref<1x32x128xf32, #tpu.memory_space<vmem>>, %arg3: memref<1x32x128xf32, #tpu.memory_space<vmem>>, %arg4: memref<32x32xf32, #tpu.memory_space<vmem>>, %arg5: memref<32x32xf32, #tpu.memory_space<vmem>>, %arg6: memref<32x1xf32, #tpu.memory_space<vmem>>, %arg7: memref<1x32x128xf32, #tpu.memory_space<vmem>>) attributes {dimension_semantics = [#tpu.dimension_semantics<parallel>, #tpu.dimension_semantics<parallel>], iteration_bounds = array<i64: 2, 2>, scalar_prefetch = 0 : i64, scratch_operands = 0 : i64, tpu.core_type = #tpu.core_type<tc>, window_params = [{transform_indices = @transform_0, window_bounds = array<i64: 1, 32, 128>}, {transform_indices = @transform_1, window_bounds = array<i64: 1, 32, 128>}, {pipeline_mode = #tpu.pipeline_mode<synchronous>, transform_indices = @transform_2, window_bounds = array<i64: 32, 32>}, {pipeline_mode = #tpu.pipeline_mode<synchronous>, transform_indices = @transform_3, window_bounds = array<i64: 32, 32>}, {pipeline_mode = #tpu.pipeline_mode<synchronous>, transform_indices = @transform_4, window_bounds = array<i64: 32, 1>}, {transform_indices = @transform_5, window_bounds = array<i64: 1, 32, 128>}]} {
    %c0 = arith.constant 0 : index
    %c0_0 = arith.constant 0 : index
    %0 = vector.load %arg4[%c0, %c0_0] : memref<32x32xf32, #tpu.memory_space<vmem>>, vector<32x32xf32>
    %c0_1 = arith.constant 0 : index
    %c0_2 = arith.constant 0 : index
    %c0_3 = arith.constant 0 : index
    %1 = vector.load %arg2[%c0_1, %c0_2, %c0_3] : memref<1x32x128xf32, #tpu.memory_space<vmem>>, vector<1x32x128xf32>
    %2 = vector.shape_cast %1 : vector<1x32x128xf32> to vector<32x128xf32>
    %cst = arith.constant dense<0.000000e+00> : vector<32x128xf32>
    %3 = tpu.matmul %0, %2, %cst {dimension_numbers = #tpu.dot_dimension_numbers<[1], [0], [0], [1], [0, 0, 1, 1], [], []>} : vector<32x32xf32>, vector<32x128xf32>, vector<32x128xf32> -> vector<32x128xf32>
    %c0_4 = arith.constant 0 : index
    %c0_5 = arith.constant 0 : index
    %4 = vector.load %arg5[%c0_4, %c0_5] : memref<32x32xf32, #tpu.memory_space<vmem>>, vector<32x32xf32>
    %c0_6 = arith.constant 0 : index
    %c0_7 = arith.constant 0 : index
    %c0_8 = arith.constant 0 : index
    %5 = vector.load %arg3[%c0_6, %c0_7, %c0_8] : memref<1x32x128xf32, #tpu.memory_space<vmem>>, vector<1x32x128xf32>
    %6 = vector.shape_cast %5 : vector<1x32x128xf32> to vector<32x128xf32>
    %cst_9 = arith.constant dense<0.000000e+00> : vector<32x128xf32>
    %7 = tpu.matmul %4, %6, %cst_9 {dimension_numbers = #tpu.dot_dimension_numbers<[1], [0], [0], [1], [0, 0, 1, 1], [], []>} : vector<32x32xf32>, vector<32x128xf32>, vector<32x128xf32> -> vector<32x128xf32>
    %8 = arith.addf %3, %7 : vector<32x128xf32>
    %c0_10 = arith.constant 0 : index
    %c0_11 = arith.constant 0 : index
    %9 = vector.load %arg6[%c0_10, %c0_11] : memref<32x1xf32, #tpu.memory_space<vmem>>, vector<32x1xf32>
    %10 = vector.broadcast %9 : vector<32x1xf32> to vector<32x128xf32>
    %11 = arith.addf %8, %10 : vector<32x128xf32>
    %c0_12 = arith.constant 0 : index
    %c0_13 = arith.constant 0 : index
    %c0_14 = arith.constant 0 : index
    %12 = vector.load %arg7[%c0_12, %c0_13, %c0_14] : memref<1x32x128xf32, #tpu.memory_space<vmem>>, vector<1x32x128xf32>
    %13 = vector.shape_cast %12 : vector<1x32x128xf32> to vector<32x128xf32>
    %14 = vector.shape_cast %11 : vector<32x128xf32> to vector<1x32x128xf32>
    tpu.vector_store %arg7[%c0_12, %c0_13, %c0_14], %14 {strides = array<i32>} : memref<1x32x128xf32, #tpu.memory_space<vmem>>, vector<1x32x128xf32>,
    return
  }
  func.func @transform_0(%arg0: i32, %arg1: i32) -> (i32, i32, i32) {
    %c0_i32 = arith.constant 0 : i32
    %c0_i32_0 = arith.constant 0 : i32
    return %arg0, %c0_i32, %arg1 : i32, i32, i32
  }
  func.func @transform_1(%arg0: i32, %arg1: i32) -> (i32, i32, i32) {
    %c0_i32 = arith.constant 0 : i32
    %c0_i32_0 = arith.constant 0 : i32
    return %arg0, %c0_i32, %arg1 : i32, i32, i32
  }
  func.func @transform_2(%arg0: i32, %arg1: i32) -> (i32, i32) {
    %c0_i32 = arith.constant 0 : i32
    %c0_i32_0 = arith.constant 0 : i32
    %c0_i32_1 = arith.constant 0 : i32
    return %c0_i32, %c0_i32_0 : i32, i32
  }
  func.func @transform_3(%arg0: i32, %arg1: i32) -> (i32, i32) {
    %c0_i32 = arith.constant 0 : i32
    %c0_i32_0 = arith.constant 0 : i32
    %c0_i32_1 = arith.constant 0 : i32
    return %c0_i32, %c0_i32_0 : i32, i32
  }
  func.func @transform_4(%arg0: i32, %arg1: i32) -> (i32, i32) {
    %c0_i32 = arith.constant 0 : i32
    %c0_i32_0 = arith.constant 0 : i32
    %c0_i32_1 = arith.constant 0 : i32
    return %c0_i32, %c0_i32_0 : i32, i32
  }
  func.func @transform_5(%arg0: i32, %arg1: i32) -> (i32, i32, i32) {
    %c0_i32 = arith.constant 0 : i32
    %c0_i32_0 = arith.constant 0 : i32
    return %arg0, %c0_i32, %arg1 : i32, i32, i32
  }
}

</mosaic_0001>

<bundles_post_ra>
// kernel: tpu_custom_call.1
= control target key start
LH: loop header
LB: loop body
LE: loop exit
PB: predicated region body
PF: predicated region fallthrough
CT: control target
= control target key end

     0   :  { %s1468_s0 = inlined_call_operand.hbm [shape: f32[2,32,256], index: 0, kind: input, shape index: {}]   ;;  %s1469_s1 = inlined_call_operand.hbm [shape: f32[2,32,256], index: 1, kind: input, shape index: {}]   ;;  %s1470_s2 = inlined_call_operand.vmem [shape: f32[32,32], index: 2, kind: input, shape index: {}]   ;;  %s1471_s3 = inlined_call_operand.hbm [shape: f32[32,32], index: 3, kind: input, shape index: {}]   ;;  %s1472_s4 = inlined_call_operand.vmem [shape: f32[32,1], index: 4, kind: input, shape index: {}]   ;;  %s1473_s5 = inlined_call_operand.hbm [shape: f32[2,32,256], index: 5, kind: output, shape index: {}]  }
   0x1   :  { %1491 = sst [smem:[#allocation19_spill]] %s1468_s0 }
   0x2   :  { %1492 = sst [smem:[#allocation20_spill]] %s1471_s3 }
   0x3   :  { %1493 = sst [smem:[#allocation21_spill]] %s1473_s5 }
   0x4   :  { %10 = vsyncpa [#allocation3], 0 }
   0x5   :  { %12 = vsyncpa [#allocation3 + $0x1], 0 }
   0x6   :  { %13 = vsyncpa [#allocation6], 0 }
   0x7   :  { %15 = vsyncpa [#allocation6 + $0x1], 0 }
   0x8   :  { %16 = vsyncpa [#allocation4], 0 }
   0x9   :  { %18 = vsyncpa [#allocation4 + $0x1], 0  ;;  %s1130_s18 = smov 0   ;;  %s1132_s19 = smov 0  }
   0xa   :  { %s1134_s20 = smov 0   ;;  %s1136_s21 = smov 0  }
   0xb   :  { %s1138_s22 = smov 0   ;;  %s1140_s23 = smov 0  }
   0xc   :  { %s1142_s24 = smov 0   ;;  %s1144_s25 = smov 0  }
   0xd LB: > { %1494 = sst [smem:[#allocation13_spill]] %s1059_s18  ;;  %s1171_s26 = sadd.s32 4294967295, %s1087_s25   ;;  %s1087_s25 = sphi %s1144_s25, %s24_s25   ;;  %s1083_s24 = sphi %s1142_s24, %s1526_s24   ;;  %s1079_s23 = sphi %s1140_s23, %s1525_s23   ;;  %s1075_s22 = sphi %s1138_s22, %s1524_s22   ;;  %s1071_s21 = sphi %s1136_s21, %s1523_s21   ;;  %s1067_s20 = sphi %s1134_s20, %s1529_s20   ;;  %s1063_s19 = sphi %s1132_s19, %s1528_s19   ;;  %s1059_s18 = sphi %s1130_s18, %s1527_s18  }
   0xe   : > { %1495 = sst [smem:[#allocation14_spill]] %s1079_s23  ;;  %s698_s27 = sadd.s32 4294967294, %s1087_s25  }
   0xf   : > { %1496 = sst [smem:[#allocation15_spill]] %s1083_s24  ;;  %p52_p0 = scmp.ne.s32.totalorder %s1067_s20, %s1063_s19 }
  0x10   : > { %p53_p1 = scmp.eq.s32.totalorder %s1087_s25, 0  ;;  %p58_p2 = scmp.ne.s32.totalorder %s1063_s19, %s1059_s18 }
  0x11   : > { %p1474_p3 = scmp.eq.s32.totalorder %s1171_s26, 0  ;;  %p175_p4 = scmp.eq.s32.totalorder %s1171_s26, 3 }
  0x12   : > { %p1182_p5 = por %p53_p1, %p52_p0  ;;  %p181_p6 = scmp.eq.s32.totalorder %s698_s27, 3 }
  0x13   : > { %p1188_p7 = por %p1474_p3, %p58_p2  ;;  %p1192_p8 = por %p175_p4, %p52_p0 }
  0x14   : > { %p1196_p9 = por %p181_p6, %p58_p2  ;;  %p699_p10 = scmp.ge.s32.totalorder %s1087_s25, 1 }
  0x15   : > { %s1498_s30 = scalar_select %p1188_p7, 1, 0 }
  0x16   : > { %s1499_s6 = scalar_select %p1192_p8, 1, 0 }
  0x17   : > { %s1500_s7 = scalar_select %p1196_p9, 1, 0 }
  0x18   : > { %p188_p11 = scmp.lt.s32.totalorder %s1087_s25, 5  ;;  %s1089_s9 = smov [#allocation7]  }
  0x19   : > { %1501 = sst [smem:[#allocation16_spill]] %s1500_s7  ;;  %s203_s10 = sshll.u32 %s1089_s9, 4  ;;  %s204_s10 = int_to_ptr.vmem [resolvable:$true] %s203_s10 }
  0x1a   : > { %p1202_p12 = pnand %p699_p10, %p188_p11  ;;  %p816_p0 = scmp.lt.s32.totalorder %s1087_s25, 4 }
  0x1b   : > { %s1505_s3 = sld [smem:[#allocation20_spill]] }
  0x1c   : > { %s1502_s8 = scalar_select %p1202_p12, 1, 0 }
  0x1d   : > { %p800_p13 = pneg %p1202_p12  ;;  %p1217_p2 = pnand %p816_p0, %p1182_p5 }
  0x1f   : > { %p1211_p1 = pnand %p800_p13, %p1474_p3 }
  0x20   : > { %s1504_s12 = scalar_select %p1217_p2, 1, 0 }
  0x21   : > { %s893_s15 = scalar_lea.hbm %s1505_s3, 512  ;;  %p895_p6 = pneg %p1211_p1 }
  0x22   : > { %p894_p4 = scmp.ne.s32.totalorder %s1505_s3, %s893_s15  ;;  %p900_p13 = scmp.lt.u32.totalorder %s893_s15, %s1505_s3 }
  0x24   : > { %p896_p10 = pnand %p895_p6, %p894_p4 }
  0x26   : > { %p897_p11 = pneg %p896_p10 }
  0x28   : > { %p902_p5 = pnand %p900_p13, %p897_p11 }
  0x2a   : > { %905 = shalt.err (!%p902_p5)
}
  0x2b   : > { %s906_s29 = scalar_lea.vmem %s204_s10, 512  ;;  %p914_p8 = scmp.lt.s32.totalorder %s204_s10, %s204_s10 }
  0x2c   : > { %p907_p0 = scmp.ne.s32.totalorder %s204_s10, %s906_s29  ;;  %p915_p7 = scmp.lt.s32.totalorder %s906_s29, %s906_s29 }
  0x2e   : > { %p909_p3 = pnand %p907_p0, %p895_p6  ;;  %p916_p12 = por %p915_p7, %p914_p8 }
  0x30   : > { %p910_p9 = pneg %p909_p3 }
  0x32   : > { %p917_p2 = pnand %p916_p12, %p910_p9 }
  0x34   : > { %920 = shalt.err (!%p917_p2)
}
  0x35   : > { %s1480_s13 = smov 128   ;;  %s1482_s14 = smov 8  }
  0x36   : > { %803 = dma.hbm_to_vmem [thread:$0]  (!%p1211_p1), %s1505_s3, 512, %s204_s10, [#allocation6], %s1480_s13, %s1480_s13, %s1482_s14  }
  0x37   : > { %s33_s17 = sadd.s32 1, %s1079_s23  ;;  %s36_s27 = sadd.s32 1, %s1083_s24 }
  0x38   : > { %p34_p3 = scmp.ge.s32.totalorder %s33_s17, 2  ;;  %s220_s9 = sand.u32 1, %s1067_s20  }
  0x39   : > { %s703_s29 = sshll.u32 %s1083_s24, 3  ;;  %s1249_s11 = sshll.u32 %s220_s9, 5 }
  0x3a   : > { %s1531_s17 = smov (%p34_p3, %s33_s17), 0  ;;  %s1533_s27 = smov (!%p34_p3, %s36_s27), %s1083_s24 }
  0x3b   : > { %1506 = sst [smem:[#allocation17_spill]] %s1531_s17  ;;  %s41_s28 = ssub.s32 %s1079_s23, %s1531_s17 }
  0x3c   : > { %p38_p7 = scmp.ge.s32.totalorder %s1533_s27, 2  ;;  %s1252_s7 = sadd.s32 %s1079_s23, %s703_s29 }
  0x3d   : > { %s1486_s10 = sshll.u32 %s1252_s7, 7  ;;  %s224_s15 = scalar_lea.vmem [#allocation2], %s1249_s11 }
  0x3e   : > { %s1535_s27 = smov (%p38_p7, %s1533_s27), 0  ;;  %s232_s16 = sshll.u32 %s224_s15, 4  ;;  %s1269_s16 = int_to_ptr.vmem [resolvable:$true] %s232_s16 }
  0x3f   : > { %1507 = sst [smem:[#allocation18_spill]] %s1535_s27  ;;  %s40_s13 = ssub.s32 %s1083_s24, %s1535_s27 }
  0x40   : > { %s1508_s0 = sld [smem:[#allocation19_spill]]  ;;  %s1267_s29 = sor.u32 %s41_s28, %s40_s13 }
  0x41   : > { %p43_p8 = scmp.eq.s32.totalorder %s1267_s29, 0  ;;  %s1272_s23 = scalar_lea.sflag [#allocation3], %s220_s9 }
  0x42   : > { %p1509_p12 = scmp.ne.s32.totalorder %s1504_s12, 0 }
  0x44   : > { %p923_p1 = pneg %p1509_p12 }
  0x46   : > { %s1265_s17 = scalar_lea.hbm %s1508_s0, %s1486_s10  ;;  %s926_s10 = scalar_lea.hbm %s1508_s0, 2048 }
  0x47   : > { %s921_s15 = scalar_lea.hbm %s1265_s17, 512  ;;  %p927_p6 = scmp.lt.u32.totalorder %s1265_s17, %s1508_s0 }
  0x48   : > { %p922_p9 = scmp.ne.s32.totalorder %s1265_s17, %s921_s15  ;;  %p928_p10 = scmp.lt.u32.totalorder %s926_s10, %s921_s15 }
  0x49   : > { %p930_p13 = scmp.lt.u32.totalorder %s921_s15, %s1265_s17 }
  0x4a   : > { %p924_p2 = pnand %p923_p1, %p922_p9  ;;  %p929_p11 = por %p928_p10, %p927_p6 }
  0x4c   : > { %p925_p4 = pneg %p924_p2  ;;  %p931_p5 = por %p930_p13, %p929_p11 }
  0x4e   : > { %p932_p0 = pnand %p931_p5, %p925_p4 }
  0x50   : > { %935 = shalt.err (!%p932_p0)
}
  0x51   : > { %s936_s9 = scalar_lea.vmem %s1269_s16, 512  ;;  %s1092_s3 = smov [#allocation2]  }
  0x52   : > { %p937_p3 = scmp.ne.s32.totalorder %s1269_s16, %s936_s9  ;;  %s941_s14 = sshll.u32 %s1092_s3, 4  ;;  %s942_s14 = int_to_ptr.vmem [resolvable:$false] %s941_s14 }
  0x53   : > { %s943_s28 = scalar_lea.vmem %s942_s14, 1024  ;;  %p944_p2 = scmp.lt.s32.totalorder %s1269_s16, %s942_s14 }
  0x54   : > { %p939_p7 = pnand %p937_p3, %p923_p1  ;;  %p945_p6 = scmp.lt.s32.totalorder %s943_s28, %s936_s9 }
  0x56   : > { %p940_p9 = pneg %p939_p7  ;;  %p946_p10 = por %p945_p6, %p944_p2 }
  0x58   : > { %p947_p11 = pnand %p946_p10, %p940_p9 }
  0x5a   : > { %950 = shalt.err (!%p947_p11)
}
  0x5b   : > { %s1093_s10 = smov 256   ;;  %s1510_s15 = smov 8  }
  0x5c   : > { %s1511_s13 = smov 128   ;;  %s1512_s9 = sadd.s32 1, %s1067_s20 }
  0x5d   : > { %807 = dma.hbm_to_vmem [thread:$0]  (!%p1509_p12), %s1265_s17, 512, %s1269_s16, %s1272_s23, %s1093_s10, %s1511_s13, %s1510_s15  }
  0x5e   : > { %s1308_s3 = scalar_select %p43_p8, %s1067_s20, %s1512_s9  }
  0x5f   : > { %s1513_s14 = sshll.u32 %s1252_s7, 7  ;;  %s246_s24 = scalar_lea.vmem [#allocation5], %s1249_s11 }
  0x60   : > { %s1315_s27 = scalar_lea.hbm %s1469_s1, %s1513_s14  ;;  %s254_s18 = sshll.u32 %s246_s24, 4  ;;  %s1319_s18 = int_to_ptr.vmem [resolvable:$true] %s254_s18 }
  0x61   : > { %s242_s5 = sand.u32 1, %s1087_s25   ;;  %s951_s17 = scalar_lea.hbm %s1315_s27, 512 }
  0x62   : > { %s1321_s23 = scalar_lea.sflag [#allocation6], %s242_s5  ;;  %p952_p8 = scmp.ne.s32.totalorder %s1315_s27, %s951_s17 }
  0x63   : > { %s956_s16 = scalar_lea.hbm %s1469_s1, 2048  ;;  %p957_p5 = scmp.lt.u32.totalorder %s1315_s27, %s1469_s1 }
  0x64   : > { %p954_p4 = pnand %p952_p8, %p923_p1  ;;  %p958_p0 = scmp.lt.u32.totalorder %s956_s16, %s951_s17 }
  0x65   : > { %p960_p7 = scmp.lt.u32.totalorder %s951_s17, %s1315_s27 }
  0x66   : > { %p955_p13 = pneg %p954_p4  ;;  %p959_p3 = por %p958_p0, %p957_p5 }
  0x68   : > { %p961_p9 = por %p960_p7, %p959_p3 }
  0x6a   : > { %p962_p2 = pnand %p961_p9, %p955_p13 }
  0x6c   : > { %965 = shalt.err (!%p962_p2)
}
  0x6d   : > { %s966_s5 = scalar_lea.vmem %s1319_s18, 512  ;;  %s1094_s24 = smov [#allocation5]  }
  0x6e   : > { %p967_p6 = scmp.ne.s32.totalorder %s1319_s18, %s966_s5  ;;  %s971_s11 = sshll.u32 %s1094_s24, 4  ;;  %s972_s11 = int_to_ptr.vmem [resolvable:$false] %s971_s11 }
  0x6f   : > { %s973_s14 = scalar_lea.vmem %s972_s11, 1024  ;;  %p974_p8 = scmp.lt.s32.totalorder %s1319_s18, %s972_s11 }
  0x70   : > { %p969_p10 = pnand %p967_p6, %p923_p1  ;;  %p975_p4 = scmp.lt.s32.totalorder %s973_s14, %s966_s5 }
  0x72   : > { %p970_p11 = pneg %p969_p10  ;;  %p976_p5 = por %p975_p4, %p974_p8 }
  0x74   : > { %p977_p0 = pnand %p976_p5, %p970_p11 }
  0x76   : > { %980 = shalt.err (!%p977_p0)
}
  0x77   : > { %810 = dma.hbm_to_vmem [thread:$0]  (!%p1509_p12), %s1315_s27, 512, %s1319_s18, %s1321_s23, %s1093_s10, %s1511_s13, %s1510_s15  }
  0x78   : > { %p1514_p1 = scmp.ne.s32.totalorder %s1502_s8, 0 }
  0x79   : > { %s1353_s28 = sand.u32 (!%p1514_p1), 1, %s1063_s19   ;;  %p1515_p13 = scmp.ne.s32.totalorder (!%p1514_p1), %s1498_s30, 0 }
  0x7a   : > { %266 = sbr.rel (%p1514_p1) target bundleno = 385 (0x181), region = 40  ;;  %s1356_s17 = sshll.u32 (!%p1514_p1), %s1353_s28, 5 }
  0x7b   : > { %s269_s12 = scalar_lea.sflag (!%p1514_p1), [#allocation3], %s1353_s28  ;;  %s272_s0 = scalar_lea.vmem (!%p1514_p1), [#allocation2], %s1356_s17 }
  0x81   : > { %1042 = dma.done.wait (%p1515_p13), %s269_s12, 512  }
  0x82   : > { %1044 = vsyncadd (%p1515_p13), %s269_s12, 4294966784  ;;  %s277_s18 = sand.u32 1, %s1171_s26   ;;  %s281_s27 = scalar_lea.vmem [#allocation5], %s1356_s17 }
  0x83   : > { %s278_s8 = scalar_lea.sflag [#allocation6], %s277_s18 }
  0x84   : > { %1046 = dma.done.wait (%p1515_p13), %s278_s8, 512  }
  0x85   : > { %1048 = vsyncadd (%p1515_p13), %s278_s8, 4294966784  ;;  %p1516_p12 = scmp.eq.s32.totalorder %s1171_s26, 0 }
  0x87   : > { %1050 = dma.done.wait (%p1516_p12), [#allocation6], 512   ;;  %p1517_p3 = pmov %p1516_p12 }
  0x88   : > { %v1095_v0 = vmov 0   ;;  %v329_v1 = vld [vmem:[%s281_s27] sm:$0xff]  ;;  %v330_v2 = vld [vmem:[%s281_s27 + $0x8] sm:$0xff]  ;;  %vm333_vm0 = vcmask 261120   ;;  %v331_v6 = vld [vmem:[%s281_s27 + $0x10] sm:$0xff]  ;;  %s722_s18 = sshll.u32 %s1075_s22, 3 }
  0x89   : > { %1052 = vsyncadd (%p1517_p3), [#allocation6], 4294966784  ;;  %891 = vset.pattern.permute.xlu0 %v1095_v0  ;;  %892 = vset.pattern.permute.xlu1 %v1095_v0  ;;  %v321_v3 = vld [vmem:[%s272_s0] sm:$0xff]  ;;  %v770_v4 = vpack.c.bf16 %v330_v2, %v329_v1  ;;  %v322_v5 = vld [vmem:[%s272_s0 + $0x8] sm:$0xff]  ;;  %s572_s8 = sadd.s32 %s1071_s21, %s722_s18  ;;  %s561_s15 = scalar_lea.sflag [#allocation4], %s1353_s28 }
  0x8a   : > { %v332_v7 = vld [vmem:[%s281_s27 + $0x18] sm:$0xff]  ;;  %v778_v8 = vpack.c.bf16 %v322_v5, %v321_v3  ;;  %v323_v10 = vld [vmem:[%s272_s0 + $0x10] sm:$0xff]  ;;  %v325_v12 = vld [vmem:[#allocation7] sm:$0xff]  ;;  %s316_s27 = scalar_lea.vmem [#allocation8], %s1356_s17  ;;  %s723_s30 = sshll.u32 %s572_s8, 7 }
  0x8b   : > { %v774_v9 = vpack.c.bf16 %v332_v7, %v331_v6  ;;  %v324_v11 = vld [vmem:[%s272_s0 + $0x18] sm:$0xff]  ;;  %771 = vmatprep.subr.bf16.mxu1 %v770_v4  ;;  %750 = vmatprep.mubr.msk.f32.mxu1 %vm333_vm0, %v325_v12  ;;  %v317_v14 = vld [vmem:[%s1470_s2] sm:$0xff]  ;;  %v530_v16 = vld [vmem:[%s1472_s4 + $0x10] sm:$0xff]  ;;  %s575_s26 = sshll.u32 %s316_s27, 4  ;;  %s1518_s17 = sld [smem:[#allocation21_spill]]  ;;  %s1409_s26 = int_to_ptr.vmem [resolvable:$true] %s575_s26 }
  0x8c   : > { %v782_v13 = vpack.c.bf16 %v324_v11, %v323_v10  ;;  %779 = vmatprep.subr.bf16.mxu0 %v778_v8  ;;  %773 = vmatpush3.bf16.msra.mxu1 %v770_v4  ;;  %v528_v15 = vld [vmem:[%s1472_s4] sm:$0xff]  ;;  %v326_v17 = vld [vmem:[#allocation7 + $0x8] sm:$0xff]  ;;  %v327_v20 = vld [vmem:[#allocation7 + $0x10] sm:$0xff]  ;;  %s981_s13 = scalar_lea.vmem %s1409_s26, 512  ;;  %p1519_p9 = scmp.ne.s32.totalorder %s1499_s6, 0 }
  0x8d   : > { %781 = vmatpush3.bf16.msra.mxu0 %v778_v8  ;;  %775 = vmatprep.subr.bf16.mxu1 %v774_v9  ;;  %v529_v18 = vld [vmem:[%s1472_s4 + $0x8] sm:$0xff]  ;;  %v319_v21 = vld [vmem:[%s1470_s2 + $0x10] sm:$0xff]  ;;  %v531_v22 = vld [vmem:[%s1472_s4 + $0x18] sm:$0xff]  ;;  %p982_p7 = scmp.ne.s32.totalorder %s1409_s26, %s981_s13  ;;  %s1096_s23 = smov [#allocation8]  }
  0x8e   : > { %783 = vmatprep.subr.bf16.mxu0 %v782_v13  ;;  %764 = vmatprep.mubr.msk.f32.mxu0 %vm333_vm0, %v317_v14  ;;  %v318_v19 = vld [vmem:[%s1470_s2 + $0x8] sm:$0xff]  ;;  %v328_v23 = vld [vmem:[#allocation7 + $0x18] sm:$0xff]  ;;  %s985_s7 = sshll.u32 %s1096_s23, 4  ;;  %s986_s7 = int_to_ptr.vmem [resolvable:$false] %s985_s7 }
  0x8f   : > { %534 = vperm.xlu0 %891, %v528_v15   ;;  %544 = vperm.xlu1 %892, %v530_v16   ;;  %v320_v24 = vld [vmem:[%s1470_s2 + $0x18] sm:$0xff]  ;;  %p983_p2 = pnand %p982_p7, %p1519_p9  ;;  %s987_s16 = scalar_lea.vmem %s986_s7, 1024 }
  0x90   : > { %777 = vmatpush3.bf16.msra.mxu1 %v774_v9  ;;  %p988_p10 = scmp.lt.s32.totalorder %s1409_s26, %s986_s7  ;;  %p989_p11 = scmp.lt.s32.totalorder %s987_s16, %s981_s13 }
  0x91   : > { %785 = vmatpush3.bf16.msra.mxu0 %v782_v13  ;;  %s1414_s10 = scalar_lea.hbm %s1518_s17, %s723_s30  ;;  %p984_p6 = pneg %p983_p2 }
  0x92   : > { %p990_p8 = por %p989_p11, %p988_p10 }
  0x93   : > { %751 = vmatmul.mubr.msk.f32.vlgmr.msra.gmra.mrb[0].mxu1 %vm333_vm0, %v326_v17  ;;  %539 = vperm.xlu0 %891, %v529_v18  }
  0x94   : > { %765 = vmatmul.mubr.msk.f32.vlgmr.msra.gmra.mrb[0].mxu0 %vm333_vm0, %v318_v19  ;;  %753 = vmatprep.mubr.msk.f32.mxu1 %vm333_vm0, %v327_v20  ;;  %p991_p4 = pnand %p990_p8, %p984_p6 }
  0x95   : > { %767 = vmatprep.mubr.msk.f32.mxu0 %vm333_vm0, %v319_v21  ;;  %549 = vperm.xlu1 %892, %v531_v22  }
  0x97   : > { %754 = vmatmul.mubr.msk.f32.gmra.mrb[2].mxu1 %vm333_vm0, %v328_v23 }
  0x98   : > { %768 = vmatmul.mubr.msk.f32.gmra.mrb[2].mxu0 %vm333_vm0, %v320_v24 }
 0x10e   : > { %v535_v25 = vpop.permute.xlu0 %534  ;;  %v545_v26 = vpop.permute.xlu1 %544 }
 0x112   : > { %v540_v28 = vpop.permute.xlu0 %539 }
 0x114   : > { %v550_v41 = vpop.permute.xlu1 %549 }
 0x166   : > { %v752_v27 = vpop.f32.mrb[0].mxu1 }
 0x167   : > { %v766_v29 = vpop.f32.mrb[0].mxu0  ;;  %v412_v30 = vpop.f32.mrb[1].mxu1 }
 0x168   : > { %v515_v31 = vadd.f32 %v766_v29, %v752_v27  ;;  %v509_v32 = vpop.f32.mrb[1].mxu0 }
 0x169   : > { %v510_v33 = vadd.f32 %v509_v32, %v412_v30 }
 0x16a   : > { %v553_v34 = vadd.f32 %v540_v28, %v515_v31  ;;  %v755_v35 = vpop.f32.mrb[2].mxu1 }
 0x16b   : > { %v552_v36 = vadd.f32 %v535_v25, %v510_v33  ;;  %v769_v37 = vpop.f32.mrb[2].mxu0  ;;  %v422_v38 = vpop.f32.mrb[3].mxu1 }
 0x16c   : > { %557 = vst [vmem:[%s316_s27 + $0x8] sm:$0xff] %v553_v34  ;;  %v525_v39 = vadd.f32 %v769_v37, %v755_v35  ;;  %v519_v40 = vpop.f32.mrb[3].mxu0 }
 0x16d   : > { %556 = vst [vmem:[%s316_s27] sm:$0xff] %v552_v36  ;;  %v520_v42 = vadd.f32 %v519_v40, %v422_v38 }
 0x16e   : > { %v555_v43 = vadd.f32 %v550_v41, %v525_v39 }
 0x16f   : > { %v554_v44 = vadd.f32 %v545_v26, %v520_v42 }
 0x170   : > { %559 = vst [vmem:[%s316_s27 + $0x18] sm:$0xff] %v555_v43 }
 0x171   : > { %558 = vst [vmem:[%s316_s27 + $0x10] sm:$0xff] %v554_v44 }
 0x172   : > { %994 = shalt.err (!%p991_p4)
}
 0x173   : > { %s995_s29 = scalar_lea.hbm %s1414_s10, 512  ;;  %s999_s24 = scalar_lea.hbm %s1518_s17, 2048 }
 0x174   : > { %p996_p5 = scmp.ne.s32.totalorder %s1414_s10, %s995_s29  ;;  %p1000_p13 = scmp.lt.u32.totalorder %s1414_s10, %s1518_s17 }
 0x175   : > { %p1001_p12 = scmp.lt.u32.totalorder %s999_s24, %s995_s29  ;;  %p1003_p7 = scmp.lt.u32.totalorder %s995_s29, %s1414_s10 }
 0x176   : > { %p997_p0 = pnand %p996_p5, %p1519_p9 }
 0x177   : > { %p1002_p3 = por %p1001_p12, %p1000_p13 }
 0x178   : > { %p998_p1 = pneg %p997_p0 }
 0x179   : > { %p1004_p2 = por %p1003_p7, %p1002_p3 }
 0x17b   : > { %p1005_p6 = pnand %p1004_p2, %p998_p1 }
 0x17d   : > { %1008 = shalt.err (!%p1005_p6)
}
 0x17e   : > { %s1097_s12 = smov 128   ;;  %s1098_s0 = smov 256  }
 0x17f   : > { %s1099_s18 = smov 8  }
 0x180   : > { %798 = dma.vmem_to_hbm [thread:$0]  (%p1519_p9), %s1409_s26, 512, %s1414_s10, %s561_s15, %s1097_s12, %s1098_s0, %s1099_s18  }
 0x181 PF: > { %s1520_s8 = sld [smem:[#allocation13_spill]]  ;;  %s1521_s27 = sld [smem:[#allocation16_spill]] }
 0x182   : > { %p818_p10 = scmp.ge.s32.totalorder %s1087_s25, 2 }
 0x187   : > { %s590_s30 = sand.u32 1, %s1520_s8   ;;  %p1522_p11 = scmp.ne.s32.totalorder %s1521_s27, 0 }
 0x188   : > { %s591_s21 = scalar_lea.sflag [#allocation4], %s590_s30 }
 0x189   : > { %p812_p8 = pnand %p818_p10, %p1522_p11 }
 0x18b   : > { %1054 = dma.done.wait (!%p812_p8), %s591_s21, 512  }
 0x18c   : > { %1056 = vsyncadd (!%p812_p8), %s591_s21, 4294966784  ;;  %s24_s25 = sadd.s32 1, %s1087_s25   ;;  %s1523_s21 = sld [smem:[#allocation14_spill]] }
 0x18d   : > { %p21_p4 = scmp.ge.s32.totalorder %s24_s25, 6   ;;  %s1524_s22 = sld [smem:[#allocation15_spill]] }
 0x18e   : > { %s1525_s23 = sld [smem:[#allocation17_spill]]  ;;  %s1526_s24 = sld [smem:[#allocation18_spill]] }
 0x18f   : > { %s1527_s18 = smov %s1063_s19  ;;  %s1528_s19 = smov %s1067_s20 }
 0x190   : > { %s1529_s20 = smov %s1308_s3  ;;  %23 = sbr.rel (!%p21_p4) target bundleno = 13 (0xd), region = 102 }
 0x197   :  { %596 = vsyncpa [#allocation3], 1 }
 0x198   :  { %598 = vsyncpa [#allocation3 + $0x1], 1 }
 0x199   :  { %599 = vsyncpa [#allocation6], 1 }
 0x19a   :  { %601 = vsyncpa [#allocation6 + $0x1], 1 }
 0x19b   :  { %602 = vsyncpa [#allocation4], 1 }
 0x19c   :  { %604 = vsyncpa [#allocation4 + $0x1], 1 }

</bundles_post_ra>
